<compile_context>
chip_gen: v7x
topology: tpu7x:2x2x1
jax: 0.10.0
libtpu: 0.0.40
codegen_flags: <defaults>
</compile_context>

<pallas_src>
import math
import functools

import jax
import jax.numpy as jnp
from jax import lax
from jax.experimental import pallas as pl
from jax.experimental.pallas import tpu as pltpu


# ------------------------------ helpers -------------------------------------

def _pick_tile(dim, target):
    """Largest 'nice' tile that divides dim (falls back to full dim)."""
    if dim <= target:
        return dim
    for t in (target, 512, 256, 128):
        if t <= dim and dim % t == 0:
            return t
    return dim


def _expand_rope(freqs, n_heads_rep):
    """(S, D//2) -> (S, n_heads_rep * D): pairwise-duplicate and tile per head."""
    dup = jnp.repeat(freqs, 2, axis=-1)              # (S, D): c0,c0,c1,c1,...
    return jnp.tile(dup, (1, n_heads_rep)).astype(jnp.float32)


# --------------------------- tiled linear kernel -----------------------------

def _linear_kernel(x_ref, w_ref, o_ref, acc_ref):
    @pl.when(pl.program_id(2) == 0)
    def _():
        acc_ref[...] = jnp.zeros_like(acc_ref)

    acc_ref[...] += jnp.dot(x_ref[...], w_ref[...],
                            preferred_element_type=jnp.float32)

    @pl.when(pl.program_id(2) == pl.num_programs(2) - 1)
    def _():
        o_ref[...] = acc_ref[...].astype(o_ref.dtype)


def linear(x, w, *, bm=256, bn=256, bk=512):
    """y = x @ w   (w stored as (in_features, out_features))."""
    M, K = x.shape
    _, N = w.shape
    tm, tn, tk = _pick_tile(M, bm), _pick_tile(N, bn), _pick_tile(K, bk)
    return pl.pallas_call(
        _linear_kernel,
        grid=(M // tm, N // tn, K // tk),
        in_specs=[pl.BlockSpec((tm, tk), lambda i, j, k: (i, k)),
                  pl.BlockSpec((tk, tn), lambda i, j, k: (k, j))],
        out_specs=pl.BlockSpec((tm, tn), lambda i, j, k: (i, j)),
        out_shape=jax.ShapeDtypeStruct((M, N), x.dtype),
        scratch_shapes=[pltpu.VMEM((tm, tn), jnp.float32)],
        compiler_params=pltpu.CompilerParams(
            dimension_semantics=("parallel", "parallel", "arbitrary")),
    )(x, w)


# ------------------------- fused RoPE + flash attention ----------------------

def _rope_slab(x, cos_f, sin_f):
    """Interleaved-pair rotary embedding on a whole (rows, H*D) slab.

    out[2i]   = x[2i]*cos[i] - x[2i+1]*sin[i]
    out[2i+1] = x[2i]*sin[i] + x[2i+1]*cos[i]
    cos_f/sin_f are the pairwise-duplicated tables; the pair swap is done with
    two XLU rolls + a parity select (pairs never straddle a head boundary
    because head_dim is even).
    """
    n = x.shape[-1]
    right = pltpu.roll(x, 1, axis=1)        # right[j] = x[j-1]
    left = pltpu.roll(x, n - 1, axis=1)     # left[j]  = x[j+1]
    even = (lax.broadcasted_iota(jnp.int32, x.shape, 1) & 1) == 0
    x_rot = jnp.where(even, -left, right)
    return x * cos_f + x_rot * sin_f


def _flash_kernel(q_ref, k_ref, v_ref, cq_ref, sq_ref, ck_ref, sk_ref,
                  o_ref, q_rot, m_sc, l_sc, acc_sc,
                  *, n_heads, n_rep, head_dim, block_q, block_k):
    D = head_dim
    qi = pl.program_id(1)
    ki = pl.program_id(2)
    scale = 1.0 / math.sqrt(D)

    # ---- init (first KV block of this Q block): accumulators + RoPE'd Q -----
    @pl.when(ki == 0)
    def _init():
        m_sc[...] = jnp.full_like(m_sc, -jnp.inf)
        l_sc[...] = jnp.zeros_like(l_sc)
        acc_sc[...] = jnp.zeros_like(acc_sc)
        q = q_ref[0].astype(jnp.float32)                     # (tq, Hq*D)
        q_rope = _rope_slab(q, cq_ref[...], sq_ref[...]) * scale
        q_rot[...] = q_rope.astype(q_rot.dtype)

    # ---- one flash step over this KV block ----------------------------------
    def flash_step(masked):
        k = _rope_slab(k_ref[0].astype(jnp.float32),
                       ck_ref[...], sk_ref[...]).astype(k_ref.dtype)  # (tk, Hkv*D)
        v = v_ref[0]                                                  # (tk, Hkv*D)
        for h in range(n_heads):
            hk = h // n_rep                      # GQA: repeat_interleave mapping
            qh = q_rot[:, h * D:(h + 1) * D]     # (tq, D), already scaled
            kh = k[:, hk * D:(hk + 1) * D]       # (tk, D)
            vh = v[:, hk * D:(hk + 1) * D]       # (tk, D)

            # q @ k^T without materializing a transpose (contract last dims).
            s = lax.dot_general(qh, kh, (((1,), (1,)), ((), ())),
                                preferred_element_type=jnp.float32)   # (tq, tk)
            if masked:  # only on the diagonal block
                row = lax.broadcasted_iota(jnp.int32, (block_q, block_k), 0)
                col = lax.broadcasted_iota(jnp.int32, (block_q, block_k), 1)
                s = jnp.where(col <= row, s, -jnp.inf)

            m_prev = m_sc[h]                                          # (tq, 1)
            m_new = jnp.maximum(m_prev, jnp.max(s, axis=-1, keepdims=True))
            alpha = jnp.exp(m_prev - m_new)
            p = jnp.exp(s - m_new)
            l_sc[h] = alpha * l_sc[h] + jnp.sum(p, axis=-1, keepdims=True)
            acc_sc[h] = alpha * acc_sc[h] + jnp.dot(
                p.astype(vh.dtype), vh, preferred_element_type=jnp.float32)
            m_sc[h] = m_new

    # causal block skipping: KV blocks strictly above the diagonal do nothing.
    @pl.when(ki < qi)
    def _full():
        flash_step(masked=False)

    @pl.when(ki == qi)
    def _diag():
        flash_step(masked=True)

    # ---- finalize on the last KV grid step -----------------------------------
    @pl.when(ki == pl.num_programs(2) - 1)
    def _finalize():
        for h in range(n_heads):
            # approx=True would use the EUP fast path; keep exact for tolerance.
            inv = pl.reciprocal(l_sc[h], approx=False)                # (tq, 1)
            o_ref[0, :, h * D:(h + 1) * D] = (acc_sc[h] * inv).astype(o_ref.dtype)


def flash_attention(xq, xk, xv, cos_q, sin_q, cos_k, sin_k,
                    *, n_heads, n_kv_heads, head_dim, block_q=256):
    """xq: (B, S, Hq*D), xk/xv: (B, S, Hkv*D)  ->  (B, S, Hq*D)."""
    B, S, Nq = xq.shape
    Nkv = xk.shape[-1]
    n_rep = n_heads // n_kv_heads

    tq = _pick_tile(S, block_q)
    tk = tq                       # equal q/k tiles keep the diagonal logic simple
    nq, nk = S // tq, S // tk

    kernel = functools.partial(
        _flash_kernel, n_heads=n_heads, n_rep=n_rep,
        head_dim=head_dim, block_q=tq, block_k=tk)

    return pl.pallas_call(
        kernel,
        grid=(B, nq, nk),
        in_specs=[
            pl.BlockSpec((1, tq, Nq),  lambda b, qi, ki: (b, qi, 0)),   # Q
            pl.BlockSpec((1, tk, Nkv), lambda b, qi, ki: (b, ki, 0)),   # K
            pl.BlockSpec((1, tk, Nkv), lambda b, qi, ki: (b, ki, 0)),   # V
            pl.BlockSpec((tq, Nq),     lambda b, qi, ki: (qi, 0)),      # cos(Q rows)
            pl.BlockSpec((tq, Nq),     lambda b, qi, ki: (qi, 0)),      # sin(Q rows)
            pl.BlockSpec((tk, Nkv),    lambda b, qi, ki: (ki, 0)),      # cos(K rows)
            pl.BlockSpec((tk, Nkv),    lambda b, qi, ki: (ki, 0)),      # sin(K rows)
        ],
        out_specs=pl.BlockSpec((1, tq, Nq), lambda b, qi, ki: (b, qi, 0)),
        out_shape=jax.ShapeDtypeStruct((B, S, Nq), xq.dtype),
        scratch_shapes=[
            pltpu.VMEM((tq, Nq), xq.dtype),                  # RoPE'd, scaled Q
            pltpu.VMEM((n_heads, tq, 1), jnp.float32),       # running max m
            pltpu.VMEM((n_heads, tq, 1), jnp.float32),       # running sum l
            pltpu.VMEM((n_heads, tq, head_dim), jnp.float32),  # accumulator
        ],
        compiler_params=pltpu.CompilerParams(
            dimension_semantics=("parallel", "parallel", "arbitrary")),
    )(xq, xk, xv, cos_q, sin_q, cos_k, sin_k)


# ------------------------------ module forward --------------------------------

def attention_forward(x, freqs_cos, freqs_sin, params, n_heads, n_kv_heads):
    B, S, dim = x.shape
    head_dim = dim // n_heads

    xf = x.reshape(B * S, dim)
    xq = linear(xf, params["wq"]).reshape(B, S, n_heads * head_dim)
    xk = linear(xf, params["wk"]).reshape(B, S, n_kv_heads * head_dim)
    xv = linear(xf, params["wv"]).reshape(B, S, n_kv_heads * head_dim)

    cos_q = _expand_rope(freqs_cos, n_heads)
    sin_q = _expand_rope(freqs_sin, n_heads)
    cos_k = _expand_rope(freqs_cos, n_kv_heads)
    sin_k = _expand_rope(freqs_sin, n_kv_heads)

    out = flash_attention(xq, xk, xv, cos_q, sin_q, cos_k, sin_k,
                          n_heads=n_heads, n_kv_heads=n_kv_heads,
                          head_dim=head_dim)

    out = linear(out.reshape(B * S, n_heads * head_dim),
                 params["wo"]).reshape(B, S, dim)
    return out


# ----------------------------- pure JAX reference ------------------------------

def _rope_ref(x, cos, sin):
    B, S, H, D = x.shape
    xp = x.astype(jnp.float32).reshape(B, S, H, D // 2, 2)
    xr, xi = xp[..., 0], xp[..., 1]
    c = cos.reshape(1, S, 1, D // 2)
    s = sin.reshape(1, S, 1, D // 2)
    out_r = xr * c - xi * s
    out_i = xr * s + xi * c
    return jnp.stack([out_r, out_i], axis=-1).reshape(B, S, H, D).astype(x.dtype)


def attention_ref(x, freqs_cos, freqs_sin, params, n_heads, n_kv_heads):
    B, S, dim = x.shape
    head_dim = dim // n_heads
    n_rep = n_heads // n_kv_heads

    xq = (x @ params["wq"]).reshape(B, S, n_heads, head_dim)
    xk = (x @ params["wk"]).reshape(B, S, n_kv_heads, head_dim)
    xv = (x @ params["wv"]).reshape(B, S, n_kv_heads, head_dim)

    xq = _rope_ref(xq, freqs_cos, freqs_sin)
    xk = _rope_ref(xk, freqs_cos, freqs_sin)
    if n_rep > 1:
        xk = jnp.repeat(xk, n_rep, axis=2)
        xv = jnp.repeat(xv, n_rep, axis=2)

    q = jnp.transpose(xq, (0, 2, 1, 3))
    k = jnp.transpose(xk, (0, 2, 1, 3))
    v = jnp.transpose(xv, (0, 2, 1, 3))

    scores = jnp.einsum("bhqd,bhkd->bhqk", q, k) / math.sqrt(head_dim)
    mask = jnp.triu(jnp.full((S, S), -jnp.inf), k=1)
    scores = scores + mask[None, None]
    probs = jax.nn.softmax(scores.astype(jnp.float32), axis=-1).astype(q.dtype)
    out = jnp.einsum("bhqk,bhkd->bhqd", probs, v)
    out = jnp.transpose(out, (0, 2, 1, 3)).reshape(B, S, -1)
    return out @ params["wo"]


# ----------------------------------- main --------------------------------------

if __name__ == "__main__":
    # Small shapes consistent with the module: dim=32, n_heads=4, n_kv_heads=2
    B, S, dim = 2, 8, 32
    n_heads, n_kv_heads = 4, 2
    head_dim = dim // n_heads

    key = jax.random.PRNGKey(0)
    kx, kq, kk, kv, ko = jax.random.split(key, 5)

    x = jax.random.normal(kx, (B, S, dim), dtype=jnp.float32)

    def init_linear(k, fan_in, fan_out):
        bound = 1.0 / math.sqrt(fan_in)
        # stored as (in, out)  ==  nn.Linear weight transposed
        return jax.random.uniform(k, (fan_in, fan_out), jnp.float32, -bound, bound)

    params = {
        "wq": init_linear(kq, dim, n_heads * head_dim),
        "wk": init_linear(kk, dim, n_kv_heads * head_dim),
        "wv": init_linear(kv, dim, n_kv_heads * head_dim),
        "wo": init_linear(ko, n_heads * head_dim, dim),
    }

    # rotary frequencies (llama-style), shape (S, head_dim // 2)
    inv_freq = 1.0 / (10000.0 ** (jnp.arange(0, head_dim, 2, dtype=jnp.float32) / head_dim))
    t = jnp.arange(S, dtype=jnp.float32)
    angles = jnp.outer(t, inv_freq)
    freqs_cos = jnp.cos(angles)
    freqs_sin = jnp.sin(angles)

    out = attention_forward(x, freqs_cos, freqs_sin, params, n_heads, n_kv_heads)
    out = jax.block_until_ready(out)

    ref = attention_ref(x, freqs_cos, freqs_sin, params, n_heads, n_kv_heads)
    ref = jax.block_until_ready(ref)

    assert out.shape == (B, S, dim), out.shape
    assert jnp.allclose(out, ref, rtol=1e-3, atol=1e-3), (
        float(jnp.max(jnp.abs(out - ref)))
    )
    print("KERNEL_OK")
</pallas_src>

<mosaic_0001>
module attributes {stable_mosaic.version = 11 : i64} {
  func.func @_linear_kernel(%arg0: i32, %arg1: i32, %arg2: i32, %arg3: memref<16x32xf32, #tpu.memory_space<vmem>>, %arg4: memref<32x32xf32, #tpu.memory_space<vmem>>, %arg5: memref<16x32xf32, #tpu.memory_space<vmem>>, %arg6: memref<16x32xf32, #tpu.memory_space<vmem>>) attributes {dimension_semantics = [#tpu.dimension_semantics<parallel>, #tpu.dimension_semantics<parallel>, #tpu.dimension_semantics<arbitrary>], iteration_bounds = array<i64: 1, 1, 1>, scalar_prefetch = 0 : i64, scratch_operands = 1 : i64, tpu.core_type = #tpu.core_type<tc>, window_params = [{transform_indices = @transform_0, window_bounds = array<i64: 16, 32>}, {transform_indices = @transform_1, window_bounds = array<i64: 32, 32>}, {transform_indices = @transform_2, window_bounds = array<i64: 16, 32>}]} {
    %c0_i32 = arith.constant 0 : i32
    %0 = arith.cmpi eq, %arg2, %c0_i32 : i32
    %1 = arith.extui %0 : i1 to i32
    %c0_i32_0 = arith.constant 0 : i32
    %2 = arith.cmpi ne, %1, %c0_i32_0 : i32
    scf.if %2 {
      %cst_10 = arith.constant 0.000000e+00 : f32
      %12 = vector.broadcast %cst_10 : f32 to vector<16x32xf32>
      %c0_11 = arith.constant 0 : index
      %c0_12 = arith.constant 0 : index
      %13 = vector.load %arg6[%c0_11, %c0_12] : memref<16x32xf32, #tpu.memory_space<vmem>>, vector<16x32xf32>
      tpu.vector_store %arg6[%c0_11, %c0_12], %12 {strides = array<i32>} : memref<16x32xf32, #tpu.memory_space<vmem>>, vector<16x32xf32>,
    } else {
    }
    %c0 = arith.constant 0 : index
    %c0_1 = arith.constant 0 : index
    %3 = vector.load %arg6[%c0, %c0_1] : memref<16x32xf32, #tpu.memory_space<vmem>>, vector<16x32xf32>
    %c0_2 = arith.constant 0 : index
    %c0_3 = arith.constant 0 : index
    %4 = vector.load %arg3[%c0_2, %c0_3] : memref<16x32xf32, #tpu.memory_space<vmem>>, vector<16x32xf32>
    %c0_4 = arith.constant 0 : index
    %c0_5 = arith.constant 0 : index
    %5 = vector.load %arg4[%c0_4, %c0_5] : memref<32x32xf32, #tpu.memory_space<vmem>>, vector<32x32xf32>
    %cst = arith.constant dense<0.000000e+00> : vector<16x32xf32>
    %6 = tpu.matmul %4, %5, %cst {dimension_numbers = #tpu.dot_dimension_numbers<[1], [0], [0], [1], [0, 0, 1, 1], [], []>} : vector<16x32xf32>, vector<32x32xf32>, vector<16x32xf32> -> vector<16x32xf32>
    %7 = arith.addf %3, %6 : vector<16x32xf32>
    %c0_6 = arith.constant 0 : index
    %c0_7 = arith.constant 0 : index
    %8 = vector.load %arg6[%c0_6, %c0_7] : memref<16x32xf32, #tpu.memory_space<vmem>>, vector<16x32xf32>
    tpu.vector_store %arg6[%c0_6, %c0_7], %7 {strides = array<i32>} : memref<16x32xf32, #tpu.memory_space<vmem>>, vector<16x32xf32>,
    %c0_i32_8 = arith.constant 0 : i32
    %9 = arith.cmpi eq, %arg2, %c0_i32_8 : i32
    %10 = arith.extui %9 : i1 to i32
    %c0_i32_9 = arith.constant 0 : i32
    %11 = arith.cmpi ne, %10, %c0_i32_9 : i32
    scf.if %11 {
      %c0_10 = arith.constant 0 : index
      %c0_11 = arith.constant 0 : index
      %12 = vector.load %arg6[%c0_10, %c0_11] : memref<16x32xf32, #tpu.memory_space<vmem>>, vector<16x32xf32>
      %c0_12 = arith.constant 0 : index
      %c0_13 = arith.constant 0 : index
      %13 = vector.load %arg5[%c0_12, %c0_13] : memref<16x32xf32, #tpu.memory_space<vmem>>, vector<16x32xf32>
      tpu.vector_store %arg5[%c0_12, %c0_13], %12 {strides = array<i32>} : memref<16x32xf32, #tpu.memory_space<vmem>>, vector<16x32xf32>,
    } else {
    }
    return
  }
  func.func @transform_0(%arg0: i32, %arg1: i32, %arg2: i32) -> (i32, i32) {
    %c0_i32 = arith.constant 0 : i32
    return %arg0, %arg2 : i32, i32
  }
  func.func @transform_1(%arg0: i32, %arg1: i32, %arg2: i32) -> (i32, i32) {
    %c0_i32 = arith.constant 0 : i32
    return %arg2, %arg1 : i32, i32
  }
  func.func @transform_2(%arg0: i32, %arg1: i32, %arg2: i32) -> (i32, i32) {
    %c0_i32 = arith.constant 0 : i32
    return %arg0, %arg1 : i32, i32
  }
}

</mosaic_0001>

<bundles_post_ra>
// kernel: tpu_custom_call.1
= control target key start
LH: loop header
LB: loop body
LE: loop exit
PB: predicated region body
PF: predicated region fallthrough
CT: control target
= control target key end

     0   :  { %7 = vsyncpa [#allocation4], 0  ;;  %s345_s0 = inlined_call_operand.hbm [shape: f32[16,32], index: 0, kind: input, shape index: {}]   ;;  %s346_s1 = inlined_call_operand.hbm [shape: f32[32,32], index: 1, kind: input, shape index: {}]   ;;  %s347_s2 = inlined_call_operand.hbm [shape: f32[16,32], index: 2, kind: output, shape index: {}]  }
   0x1   :  { %8 = vsyncpa [#allocation7], 0 }
   0x2   :  { %9 = vsyncpa [#allocation5], 0  ;;  %s271_s9 = smov [#allocation3]   ;;  %s199_s13 = scalar_lea.hbm %s345_s0, 256 }
   0x3   :  { %s15_s10 = sshll.u32 %s271_s9, 4  ;;  %p200_p0 = scmp.ne.s32.totalorder %s345_s0, %s199_s13  ;;  %s16_s10 = int_to_ptr.vmem [resolvable:$true] %s15_s10 }
   0x4   :  { %p203_p1 = scmp.lt.u32.totalorder %s199_s13, %s345_s0 }
   0x6   :  { %p205_p2 = pnand %p203_p1, %p200_p0 }
   0x8   :  { %208 = shalt.err (!%p205_p2)
}
   0x9   :  { %s209_s18 = scalar_lea.vmem %s16_s10, 256  ;;  %p214_p4 = scmp.lt.s32.totalorder %s16_s10, %s16_s10 }
   0xa   :  { %p210_p3 = scmp.ne.s32.totalorder %s16_s10, %s209_s18  ;;  %p215_p5 = scmp.lt.s32.totalorder %s209_s18, %s209_s18 }
   0xc   :  { %p216_p6 = por %p215_p5, %p214_p4 }
   0xe   :  { %p217_p7 = pnand %p216_p6, %p210_p3 }
  0x10   :  { %220 = shalt.err (!%p217_p7)
}
  0x11   :  { %s272_s19 = smov 128   ;;  %s273_s20 = smov 8  }
  0x12   :  { %21 = dma.hbm_to_vmem [thread:$0]  %s345_s0, 256, %s16_s10, [#allocation4], %s272_s19, %s272_s19, %s273_s20  }
  0x13   :  { %s274_s23 = smov [#allocation6]   ;;  %s221_s27 = scalar_lea.hbm %s346_s1, 512 }
  0x14   :  { %s27_s24 = sshll.u32 %s274_s23, 4  ;;  %p222_p8 = scmp.ne.s32.totalorder %s346_s1, %s221_s27  ;;  %s28_s24 = int_to_ptr.vmem [resolvable:$true] %s27_s24 }
  0x15   :  { %p225_p9 = scmp.lt.u32.totalorder %s221_s27, %s346_s1 }
  0x17   :  { %p227_p10 = pnand %p225_p9, %p222_p8 }
  0x19   :  { %230 = shalt.err (!%p227_p10)
}
  0x1a   :  { %s231_s4 = scalar_lea.vmem %s28_s24, 512  ;;  %p236_p12 = scmp.lt.s32.totalorder %s28_s24, %s28_s24 }
  0x1b   :  { %p232_p11 = scmp.ne.s32.totalorder %s28_s24, %s231_s4  ;;  %p237_p13 = scmp.lt.s32.totalorder %s231_s4, %s231_s4 }
  0x1d   :  { %p238_p0 = por %p237_p13, %p236_p12 }
  0x1f   :  { %p239_p1 = pnand %p238_p0, %p232_p11 }
  0x21   :  { %242 = shalt.err (!%p239_p1)
}
  0x22   :  { %33 = dma.hbm_to_vmem [thread:$0]  %s346_s1, 512, %s28_s24, [#allocation7], %s272_s19, %s272_s19, %s273_s20  }
  0x23   :  { %265 = dma.done.wait [#allocation4], 256  }
  0x24   :  { %266 = vsyncadd [#allocation4], 4294967040 }
  0x25   :  { %267 = dma.done.wait [#allocation7], 512  }
  0x26   :  { %268 = vsyncadd [#allocation7], 4294966784  ;;  %vm44_vm0 = vcmask 261120   ;;  %v275_v0 = vmov 0.0   ;;  %v51_v1 = vld [vmem:[#allocation6] sm:$0xff]  ;;  %v52_v2 = vld [vmem:[#allocation6 + $0x8] sm:$0xff] }
  0x27   :  { %46 = vst.msk [vmem:[#allocation2 + $0x8] sm:$0xff] %vm44_vm0, %v275_v0  ;;  %45 = vst.msk [vmem:[#allocation2] sm:$0xff] %vm44_vm0, %v275_v0  ;;  %v53_v3 = vld [vmem:[#allocation6 + $0x10] sm:$0xff]  ;;  %v185_v4 = vpack.c.bf16 %v52_v2, %v51_v1  ;;  %v54_v5 = vld [vmem:[#allocation6 + $0x18] sm:$0xff]  ;;  %s276_s1 = smov [#allocation8]  }
  0x28   :  { %v49_v6 = vld [vmem:[#allocation3] sm:$0xff]  ;;  %v189_v7 = vpack.c.bf16 %v54_v5, %v53_v3  ;;  %v50_v8 = vld [vmem:[#allocation3 + $0x8] sm:$0xff]  ;;  %s153_s6 = sshll.u32 %s276_s1, 4  ;;  %s154_s6 = int_to_ptr.vmem [resolvable:$true] %s153_s6 }
  0x29   :  { %182 = vmatprep.mubr.msk.f32.mxu0 %vm44_vm0, %v49_v6  ;;  %186 = vmatprep.subr.bf16.mxu0 %v185_v4  ;;  %s243_s7 = scalar_lea.vmem %s154_s6, 256  ;;  %p248_p3 = scmp.lt.s32.totalorder %s154_s6, %s154_s6 }
  0x2a   :  { %188 = vmatpush3.bf16.msra.mxu0 %v185_v4  ;;  %p244_p2 = scmp.ne.s32.totalorder %s154_s6, %s243_s7  ;;  %p249_p4 = scmp.lt.s32.totalorder %s243_s7, %s243_s7 }
  0x2b   :  { %190 = vmatprep.subr.bf16.mxu0 %v189_v7 }
  0x2c   :  { %p250_p5 = por %p249_p4, %p248_p3 }
  0x2e   :  { %192 = vmatpush3.bf16.msra.mxu0 %v189_v7  ;;  %v48_v9 = vld [vmem:[#allocation2 + $0x8] sm:$0xff]  ;;  %v47_v10 = vld [vmem:[#allocation2] sm:$0xff]  ;;  %p251_p6 = pnand %p250_p5, %p244_p2 }
  0x31   :  { %183 = vmatmul.mubr.msk.f32.vlgmr.msra.gmra.mrb[0].mxu0 %vm44_vm0, %v50_v8 }
 0x104   :  { %v184_v11 = vpop.f32.mrb[0].mxu0 }
 0x105   :  { %v138_v12 = vadd.f32 %v184_v11, %v48_v9  ;;  %v128_v13 = vpop.f32.mrb[1].mxu0 }
 0x106   :  { %v137_v14 = vadd.f32 %v128_v13, %v47_v10 }
 0x107   :  { %140 = vst.msk [vmem:[#allocation2 + $0x8] sm:$0xff] %vm44_vm0, %v138_v12 }
 0x108   :  { %139 = vst.msk [vmem:[#allocation2] sm:$0xff] %vm44_vm0, %v137_v14 }
 0x10e   :  { %v145_v15 = vld [vmem:[#allocation2 + $0x8] sm:$0xff] }
 0x10f   :  { %v144_v16 = vld [vmem:[#allocation2] sm:$0xff]  ;;  %147 = vst.msk [vmem:[#allocation8 + $0x8] sm:$0xff] %vm44_vm0, %v145_v15 }
 0x110   :  { %146 = vst.msk [vmem:[#allocation8] sm:$0xff] %vm44_vm0, %v144_v16 }
 0x111   :  { %254 = shalt.err (!%p251_p6)
}
 0x112   :  { %s255_s10 = scalar_lea.hbm %s347_s2, 256 }
 0x113   :  { %p256_p7 = scmp.ne.s32.totalorder %s347_s2, %s255_s10  ;;  %p259_p8 = scmp.lt.u32.totalorder %s255_s10, %s347_s2 }
 0x115   :  { %p261_p9 = pnand %p259_p8, %p256_p7 }
 0x117   :  { %264 = shalt.err (!%p261_p9)
}
 0x118   :  { %159 = dma.vmem_to_hbm [thread:$0]  %s154_s6, 256, %s347_s2, [#allocation5], %s272_s19, %s272_s19, %s273_s20  }
 0x119   :  { %269 = dma.done.wait [#allocation5], 256  }
 0x11a   :  { %270 = vsyncadd [#allocation5], 4294967040 }
 0x11b   :  { %163 = vsyncpa [#allocation4], 1 }
 0x11c   :  { %164 = vsyncpa [#allocation7], 1 }
 0x11d   :  { %165 = vsyncpa [#allocation5], 1 }

</bundles_post_ra>
